<compile_context>
chip_gen: v5e
topology: v5e:2x2
jax: 0.10.0
libtpu: 0.0.40
codegen_flags: <defaults>
</compile_context>

<pallas_src>
import functools

import jax
import jax.numpy as jnp
from jax.experimental import pallas as pl
from jax.experimental.pallas import tpu as pltpu

_BN_EPS = 1e-5
_VMEM_LIMIT = 48 * 1024 * 1024   # conservative budget; fits v7x's 64 MiB with headroom


# ----------------------------- Pallas kernels ------------------------------------

def _matmul_bn_kernel(a_ref, b_ref, c_ref, o_ref, acc_ref, *, relu):
    # Tiled (TM,TK)@(TK,TN) on the MXU with f32 accumulation across the K grid axis.
    # BN scale is pre-folded into b; epilogue = + bias (+ ReLU).
    @pl.when(pl.program_id(2) == 0)
    def _():
        acc_ref[...] = jnp.zeros_like(acc_ref)

    acc_ref[...] += jnp.dot(a_ref[...], b_ref[...], preferred_element_type=jnp.float32)

    @pl.when(pl.program_id(2) == pl.num_programs(2) - 1)
    def _():
        y = acc_ref[...] + c_ref[...]
        if relu:
            y = jnp.maximum(y, 0.0)
        o_ref[...] = y


def _matmul_bn_res_kernel(a_ref, b_ref, c_ref, r_ref, o_ref, acc_ref, *, relu):
    # Same as above, fused with the residual (identity) add of a Bottleneck block.
    @pl.when(pl.program_id(2) == 0)
    def _():
        acc_ref[...] = jnp.zeros_like(acc_ref)

    acc_ref[...] += jnp.dot(a_ref[...], b_ref[...], preferred_element_type=jnp.float32)

    @pl.when(pl.program_id(2) == pl.num_programs(2) - 1)
    def _():
        y = acc_ref[...] + c_ref[...] + r_ref[...]
        if relu:
            y = jnp.maximum(y, 0.0)
        o_ref[...] = y


def _max9_kernel(*refs):
    # 9 window taps of MaxPool2d(3,2,1), tiled over rows; elementwise tree max (VPU).
    o_ref = refs[-1]
    y = refs[0][...]
    for r in refs[1:9]:
        y = jnp.maximum(y, r[...])
    o_ref[...] = y


def _head_kernel(x_ref, w_ref, o_ref):
    # x: (N, H*W, C) -> adaptive avg-pool(1,1) + Linear(no bias) + F.normalize(p=2, dim=1)
    pooled = jnp.mean(x_ref[...], axis=1)                                   # (N, C)
    emb = jnp.dot(pooled, w_ref[...], preferred_element_type=jnp.float32)   # (N, E)
    ssq = jnp.sum(emb * emb, axis=1, keepdims=True)
    o_ref[...] = emb * jax.lax.rsqrt(jnp.maximum(ssq, 1e-24))               # EUP rsqrt


# ----------------------------- glue helpers --------------------------------------

def _round_up(n, m):
    return -(-n // m) * m


def _pad2(x, rows, cols):
    r, c = x.shape
    if (rows, cols) != (r, c):
        x = jnp.pad(x, ((0, rows - r), (0, cols - c)))
    return x


def _choose_tiles(m, n, k):
    """MXU-aligned tile sizes. bf16 blocks want (16,128)-aligned sublane/lane dims."""
    tm = 256 if m >= 256 else _round_up(m, 16)
    tn = 256 if n >= 256 else _round_up(n, 128)
    k128 = _round_up(k, 128)
    nk = -(-k128 // 512)                       # number of K steps (<=512 wide each)
    tk = _round_up(-(-k128 // nk), 128)
    return tm, tn, tk, nk


def _im2col(x, kh, kw, stride, pad):
    # x: (N, H, W, C) -> patches (N*Ho*Wo, kh*kw*C); feature order = (kh, kw, Cin),
    # matching a (Cout, Cin, kh, kw) PyTorch weight transposed to (kh, kw, Cin, Cout).
    n, h, w, c = x.shape
    if pad > 0:
        x = jnp.pad(x, ((0, 0), (pad, pad), (pad, pad), (0, 0)))
    hp, wp = h + 2 * pad, w + 2 * pad
    ho = (hp - kh) // stride + 1
    wo = (wp - kw) // stride + 1
    pieces = []
    for i in range(kh):
        for j in range(kw):
            s = jax.lax.slice(
                x, (0, i, j, 0),
                (n, i + (ho - 1) * stride + 1, j + (wo - 1) * stride + 1, c),
                (1, stride, stride, 1))
            pieces.append(s)
    patches = jnp.stack(pieces, axis=3)          # (n, ho, wo, kh*kw, c)
    return patches.reshape(n * ho * wo, kh * kw * c), (n, ho, wo)


@functools.partial(jax.jit, static_argnames=("stride", "padding", "relu", "has_residual"))
def _conv_bn_act(x, w, scale, bias, residual, *, stride, padding, relu, has_residual):
    """conv2d (no bias) + inference BatchNorm [+ residual] [+ ReLU], NHWC, via tiled MXU matmul."""
    cout, cin, kh, kw = w.shape

    if kh == 1 and kw == 1 and padding == 0:
        # 1x1 conv fast path: no im2col, just (strided) reshape.
        xs = x[:, ::stride, ::stride, :] if stride != 1 else x
        n, ho, wo, _ = xs.shape
        cols = xs.reshape(n * ho * wo, cin)
    else:
        cols, (n, ho, wo) = _im2col(x, kh, kw, stride, padding)

    m, k = cols.shape
    tm, tn, tk, nk = _choose_tiles(m, cout, k)
    mp, np_, kp = _round_up(m, tm), _round_up(cout, tn), tk * nk

    # Fold BN scale into the weights (epilogue keeps only bias/residual/relu).
    wm = jnp.transpose(w, (2, 3, 1, 0)).reshape(kh * kw * cin, cout) * scale[None, :]

    a = _pad2(cols, mp, kp).astype(jnp.bfloat16)          # bf16 MXU operands,
    b = _pad2(wm, kp, np_).astype(jnp.bfloat16)           # f32 accumulation.
    c = _pad2(bias.reshape(1, -1), 1, np_)

    in_specs = [
        pl.BlockSpec((tm, tk), lambda i, j, kk: (i, kk)),
        pl.BlockSpec((tk, tn), lambda i, j, kk: (kk, j)),   # resident across i and k
        pl.BlockSpec((1, tn), lambda i, j, kk: (0, j)),
    ]
    operands = [a, b, c]
    if has_residual:
        r = _pad2(residual.reshape(n * ho * wo, cout), mp, np_)
        in_specs.append(pl.BlockSpec((tm, tn), lambda i, j, kk: (i, j)))
        operands.append(r)
        kernel = functools.partial(_matmul_bn_res_kernel, relu=relu)
    else:
        kernel = functools.partial(_matmul_bn_kernel, relu=relu)

    out = pl.pallas_call(
        kernel,
        out_shape=jax.ShapeDtypeStruct((mp, np_), jnp.float32),
        grid_spec=pltpu.PrefetchScalarGridSpec(
            num_scalar_prefetch=0,
            grid=(mp // tm, np_ // tn, nk),
            in_specs=in_specs,
            out_specs=pl.BlockSpec((tm, tn), lambda i, j, kk: (i, j)),
            scratch_shapes=[pltpu.VMEM((tm, tn), jnp.float32)],
        ),
        compiler_params=pltpu.CompilerParams(
            dimension_semantics=("parallel", "parallel", "arbitrary"),
            vmem_limit_bytes=_VMEM_LIMIT),
    )(*operands)
    return out[:m, :cout].reshape(n, ho, wo, cout)


@jax.jit
def _maxpool_3x3_s2_p1(x):
    """MaxPool2d(kernel_size=3, stride=2, padding=1) on NHWC, tiled over output rows."""
    n, h, w, c = x.shape
    ho = (h + 2 - 3) // 2 + 1
    wo = (w + 2 - 3) // 2 + 1
    xp = jnp.pad(x, ((0, 0), (1, 1), (1, 1), (0, 0)), constant_values=-jnp.inf)
    m = n * ho * wo
    taps = []
    for i in range(3):
        for j in range(3):
            s = jax.lax.slice(
                xp, (0, i, j, 0),
                (n, i + (ho - 1) * 2 + 1, j + (wo - 1) * 2 + 1, c),
                (1, 2, 2, 1))
            taps.append(s.reshape(m, c))
    tm = min(512, _round_up(m, 8))
    mp = _round_up(m, tm)
    if mp != m:
        taps = [jnp.pad(t, ((0, mp - m), (0, 0))) for t in taps]
    out = pl.pallas_call(
        _max9_kernel,
        out_shape=jax.ShapeDtypeStruct((mp, c), jnp.float32),
        grid_spec=pltpu.PrefetchScalarGridSpec(
            num_scalar_prefetch=0,
            grid=(mp // tm,),
            in_specs=[pl.BlockSpec((tm, c), lambda i: (i, 0))] * 9,
            out_specs=pl.BlockSpec((tm, c), lambda i: (i, 0)),
        ),
        compiler_params=pltpu.CompilerParams(
            dimension_semantics=("parallel",),
            vmem_limit_bytes=_VMEM_LIMIT),
    )(*taps)
    return out[:m].reshape(n, ho, wo, c)


@jax.jit
def _head(x, fc_w):
    """AdaptiveAvgPool2d((1,1)) + flatten + Linear(2048 -> E, bias=False) + F.normalize(p=2, dim=1)."""
    n, h, w, c = x.shape
    e = fc_w.shape[0]
    np_ = _round_up(n, 8)
    x3 = x.reshape(n, h * w, c)
    if np_ != n:
        x3 = jnp.pad(x3, ((0, np_ - n), (0, 0), (0, 0)))
    wt = jnp.transpose(fc_w)                     # (C, E)
    out = pl.pallas_call(
        _head_kernel,
        out_shape=jax.ShapeDtypeStruct((np_, e), jnp.float32),
        in_specs=[pl.BlockSpec(memory_space=pltpu.MemorySpace.VMEM)] * 2,
        out_specs=pl.BlockSpec(memory_space=pltpu.MemorySpace.VMEM),
        compiler_params=pltpu.CompilerParams(vmem_limit_bytes=_VMEM_LIMIT),
    )(x3, wt)
    return out[:n]


# ----------------------------- parameter init ------------------------------------

def _init_conv(key, cout, cin, kh, kw):
    fan_in = cin * kh * kw
    std = (2.0 / fan_in) ** 0.5                  # Kaiming-normal style, deterministic
    return std * jax.random.normal(key, (cout, cin, kh, kw), jnp.float32)


def _init_bn(c):
    gamma = jnp.ones((c,), jnp.float32)
    beta = jnp.zeros((c,), jnp.float32)
    running_mean = jnp.zeros((c,), jnp.float32)
    running_var = jnp.ones((c,), jnp.float32)
    scale = gamma / jnp.sqrt(running_var + _BN_EPS)
    bias = beta - running_mean * scale
    return {"scale": scale, "bias": bias}


def _init_bottleneck(key, inplanes, planes, stride, downsample):
    k = jax.random.split(key, 4)
    p = {
        "stride": stride,
        "conv1_w": _init_conv(k[0], planes, inplanes, 1, 1), "bn1": _init_bn(planes),
        "conv2_w": _init_conv(k[1], planes, planes, 3, 3),   "bn2": _init_bn(planes),
        "conv3_w": _init_conv(k[2], planes * 4, planes, 1, 1), "bn3": _init_bn(planes * 4),
    }
    if downsample:
        p["ds_w"] = _init_conv(k[3], planes * 4, inplanes, 1, 1)
        p["ds_bn"] = _init_bn(planes * 4)
    return p


def _make_layer(key, inplanes, planes, blocks, stride):
    keys = jax.random.split(key, blocks)
    downsample = (stride != 1) or (inplanes != planes * 4)
    layer = [_init_bottleneck(keys[0], inplanes, planes, stride, downsample)]
    inplanes = planes * 4
    for i in range(1, blocks):
        layer.append(_init_bottleneck(keys[i], inplanes, planes, 1, False))
    return layer, inplanes


def init_resnet101_triplet_params(key, embedding_dimension=512):
    keys = jax.random.split(key, 6)
    params = {"conv1_w": _init_conv(keys[0], 64, 3, 7, 7), "bn1": _init_bn(64)}
    inplanes = 64
    params["layer1"], inplanes = _make_layer(keys[1], inplanes, 64, 3, 1)     # ResNet-101:
    params["layer2"], inplanes = _make_layer(keys[2], inplanes, 128, 4, 2)    # [3, 4, 23, 3]
    params["layer3"], inplanes = _make_layer(keys[3], inplanes, 256, 23, 2)
    params["layer4"], inplanes = _make_layer(keys[4], inplanes, 512, 3, 2)
    # replaced fc: Linear(2048, embedding_dimension, bias=False); PyTorch weight layout (out, in)
    params["fc_w"] = 0.02 * jax.random.normal(keys[5], (embedding_dimension, inplanes), jnp.float32)
    return params


# ----------------------------- forward pass --------------------------------------

def _bottleneck_forward(x, p):
    stride = p["stride"]
    if "ds_w" in p:
        identity = _conv_bn_act(x, p["ds_w"], p["ds_bn"]["scale"], p["ds_bn"]["bias"], None,
                                stride=stride, padding=0, relu=False, has_residual=False)
    else:
        identity = x
    out = _conv_bn_act(x, p["conv1_w"], p["bn1"]["scale"], p["bn1"]["bias"], None,
                       stride=1, padding=0, relu=True, has_residual=False)
    out = _conv_bn_act(out, p["conv2_w"], p["bn2"]["scale"], p["bn2"]["bias"], None,
                       stride=stride, padding=1, relu=True, has_residual=False)
    out = _conv_bn_act(out, p["conv3_w"], p["bn3"]["scale"], p["bn3"]["bias"], identity,
                       stride=1, padding=0, relu=True, has_residual=True)
    return out


def resnet101_triplet_forward(params, images_nchw):
    """images_nchw: (N, 3, H, W) float32 (PyTorch convention). Returns (N, embedding_dim)."""
    x = jnp.transpose(images_nchw.astype(jnp.float32), (0, 2, 3, 1))   # NCHW -> NHWC
    x = _conv_bn_act(x, params["conv1_w"], params["bn1"]["scale"], params["bn1"]["bias"], None,
                     stride=2, padding=3, relu=True, has_residual=False)
    x = _maxpool_3x3_s2_p1(x)
    for name in ("layer1", "layer2", "layer3", "layer4"):
        for block in params[name]:
            x = _bottleneck_forward(x, block)
    return _head(x, params["fc_w"])


# ----------------------------- main -----------------------------------------------

if __name__ == "__main__":
    key = jax.random.PRNGKey(0)
    pkey, xkey = jax.random.split(key)

    params = init_resnet101_triplet_params(pkey, embedding_dimension=512)
    images = jax.random.normal(xkey, (2, 3, 32, 32), jnp.float32)   # small NCHW images

    emb = resnet101_triplet_forward(params, images)
    emb = jax.block_until_ready(emb)

    assert emb.shape == (2, 512), emb.shape
    assert bool(jnp.all(jnp.isfinite(emb)))
    norms = jnp.sqrt(jnp.sum(emb * emb, axis=1))
    assert bool(jnp.all(jnp.abs(norms - 1.0) < 1e-3)), norms
    print("KERNEL_OK")
</pallas_src>

<mosaic_0001>
module attributes {stable_mosaic.version = 11 : i64} {
  func.func @_matmul_bn_kernel(%arg0: i32, %arg1: i32, %arg2: i32, %arg3: memref<256x256xbf16, #tpu.memory_space<vmem>>, %arg4: memref<256x128xbf16, #tpu.memory_space<vmem>>, %arg5: memref<1x128xf32, #tpu.memory_space<vmem>>, %arg6: memref<256x128xf32, #tpu.memory_space<vmem>>, %arg7: memref<256x128xf32, #tpu.memory_space<vmem>>) attributes {dimension_semantics = [#tpu.dimension_semantics<parallel>, #tpu.dimension_semantics<parallel>, #tpu.dimension_semantics<arbitrary>], iteration_bounds = array<i64: 2, 1, 1>, scalar_prefetch = 0 : i64, scratch_operands = 1 : i64, tpu.core_type = #tpu.core_type<tc>, window_params = [{transform_indices = @transform_0, window_bounds = array<i64: 256, 256>}, {transform_indices = @transform_1, window_bounds = array<i64: 256, 128>}, {transform_indices = @transform_2, window_bounds = array<i64: 1, 128>}, {transform_indices = @transform_3, window_bounds = array<i64: 256, 128>}]} {
    %c0_i32 = arith.constant 0 : i32
    %0 = arith.cmpi eq, %arg2, %c0_i32 : i32
    %1 = arith.extui %0 : i1 to i32
    %c0_i32_0 = arith.constant 0 : i32
    %2 = arith.cmpi ne, %1, %c0_i32_0 : i32
    scf.if %2 {
      %cst_10 = arith.constant 0.000000e+00 : f32
      %12 = vector.broadcast %cst_10 : f32 to vector<256x128xf32>
      %c0_11 = arith.constant 0 : index
      %c0_12 = arith.constant 0 : index
      %13 = vector.load %arg7[%c0_11, %c0_12] : memref<256x128xf32, #tpu.memory_space<vmem>>, vector<256x128xf32>
      tpu.vector_store %arg7[%c0_11, %c0_12], %12 {strides = array<i32>} : memref<256x128xf32, #tpu.memory_space<vmem>>, vector<256x128xf32>,
    } else {
    }
    %c0 = arith.constant 0 : index
    %c0_1 = arith.constant 0 : index
    %3 = vector.load %arg7[%c0, %c0_1] : memref<256x128xf32, #tpu.memory_space<vmem>>, vector<256x128xf32>
    %c0_2 = arith.constant 0 : index
    %c0_3 = arith.constant 0 : index
    %4 = vector.load %arg3[%c0_2, %c0_3] : memref<256x256xbf16, #tpu.memory_space<vmem>>, vector<256x256xbf16>
    %c0_4 = arith.constant 0 : index
    %c0_5 = arith.constant 0 : index
    %5 = vector.load %arg4[%c0_4, %c0_5] : memref<256x128xbf16, #tpu.memory_space<vmem>>, vector<256x128xbf16>
    %cst = arith.constant dense<0.000000e+00> : vector<256x128xf32>
    %6 = tpu.matmul %4, %5, %cst {dimension_numbers = #tpu.dot_dimension_numbers<[1], [0], [0], [1], [0, 0, 1, 1], [], []>} : vector<256x256xbf16>, vector<256x128xbf16>, vector<256x128xf32> -> vector<256x128xf32>
    %7 = arith.addf %3, %6 : vector<256x128xf32>
    %c0_6 = arith.constant 0 : index
    %c0_7 = arith.constant 0 : index
    %8 = vector.load %arg7[%c0_6, %c0_7] : memref<256x128xf32, #tpu.memory_space<vmem>>, vector<256x128xf32>
    tpu.vector_store %arg7[%c0_6, %c0_7], %7 {strides = array<i32>} : memref<256x128xf32, #tpu.memory_space<vmem>>, vector<256x128xf32>,
    %c0_i32_8 = arith.constant 0 : i32
    %9 = arith.cmpi eq, %arg2, %c0_i32_8 : i32
    %10 = arith.extui %9 : i1 to i32
    %c0_i32_9 = arith.constant 0 : i32
    %11 = arith.cmpi ne, %10, %c0_i32_9 : i32
    scf.if %11 {
      %c0_10 = arith.constant 0 : index
      %c0_11 = arith.constant 0 : index
      %12 = vector.load %arg7[%c0_10, %c0_11] : memref<256x128xf32, #tpu.memory_space<vmem>>, vector<256x128xf32>
      %c0_12 = arith.constant 0 : index
      %c0_13 = arith.constant 0 : index
      %13 = vector.load %arg5[%c0_12, %c0_13] : memref<1x128xf32, #tpu.memory_space<vmem>>, vector<1x128xf32>
      %14 = vector.broadcast %13 : vector<1x128xf32> to vector<256x128xf32>
      %15 = arith.addf %12, %14 : vector<256x128xf32>
      %cst_14 = arith.constant 0.000000e+00 : f32
      %16 = vector.broadcast %cst_14 : f32 to vector<256x128xf32>
      %17 = arith.maximumf %15, %16 : vector<256x128xf32>
      %c0_15 = arith.constant 0 : index
      %c0_16 = arith.constant 0 : index
      %18 = vector.load %arg6[%c0_15, %c0_16] : memref<256x128xf32, #tpu.memory_space<vmem>>, vector<256x128xf32>
      tpu.vector_store %arg6[%c0_15, %c0_16], %17 {strides = array<i32>} : memref<256x128xf32, #tpu.memory_space<vmem>>, vector<256x128xf32>,
    } else {
    }
    return
  }
  func.func @transform_0(%arg0: i32, %arg1: i32, %arg2: i32) -> (i32, i32) {
    %c0_i32 = arith.constant 0 : i32
    return %arg0, %arg2 : i32, i32
  }
  func.func @transform_1(%arg0: i32, %arg1: i32, %arg2: i32) -> (i32, i32) {
    %c0_i32 = arith.constant 0 : i32
    return %arg2, %arg1 : i32, i32
  }
  func.func @transform_2(%arg0: i32, %arg1: i32, %arg2: i32) -> (i32, i32) {
    %c0_i32 = arith.constant 0 : i32
    %c0_i32_0 = arith.constant 0 : i32
    return %c0_i32, %arg1 : i32, i32
  }
  func.func @transform_3(%arg0: i32, %arg1: i32, %arg2: i32) -> (i32, i32) {
    %c0_i32 = arith.constant 0 : i32
    return %arg0, %arg1 : i32, i32
  }
}

</mosaic_0001>

<bundles_post_ra>
// kernel: _conv_bn_act.1
= control target key start
LH: loop header
LB: loop body
LE: loop exit
PB: predicated region body
PF: predicated region fallthrough
CT: control target
= control target key end

     0   :  { %8 = vsyncpa [#allocation4], 0  ;;  %s1872_s0 = inlined_call_operand.vmem [shape: bf16[512,256], index: 0, kind: input, shape index: {}]   ;;  %s1873_s1 = inlined_call_operand.vmem [shape: bf16[256,128], index: 1, kind: input, shape index: {}]   ;;  %s1874_s2 = inlined_call_operand.vmem [shape: f32[1,128], index: 2, kind: input, shape index: {}]   ;;  %s1875_s3 = inlined_call_operand.hbm [shape: f32[512,128], index: 3, kind: output, shape index: {}]  }
   0x1   :  { %10 = vsyncpa [#allocation4 + $0x1], 0  ;;  %s1586_s12 = smov 0   ;;  %s1588_s13 = smov 0  }
   0x2   :  { %s1590_s14 = smov 0   ;;  %s1592_s15 = smov 0  }
   0x3   :  { %s1594_s16 = smov 0   ;;  %s1596_s17 = smov 0  }
   0x4 LB: > { %s1152_s18 = sadd.s32 4294967295, %s1562_s17   ;;  %s1153_s19 = sadd.s32 4294967294, %s1562_s17   ;;  %s1562_s17 = sphi %s1596_s17, %s16_s17   ;;  %s1558_s16 = sphi %s1594_s16, %s1882_s16   ;;  %s1554_s15 = sphi %s1592_s15, %s1881_s15   ;;  %s1550_s14 = sphi %s1590_s14, %s1880_s14   ;;  %s1546_s13 = sphi %s1588_s13, %s1879_s13   ;;  %s1542_s12 = sphi %s1586_s12, %s1878_s12  }
   0x5   : > { %s35_s20 = sadd.s32 1, %s1558_s16  ;;  %s126_s21 = sadd.s32 1, %s1550_s14 }
   0x6   : > { %p37_p0 = scmp.ge.s32.totalorder %s35_s20, 2  ;;  %p136_p1 = scmp.ne.s32.totalorder %s1550_s14, %s1546_s13 }
   0x7   : > { %p137_p2 = scmp.eq.s32.totalorder %s1152_s18, 1  ;;  %p142_p3 = scmp.ne.s32.totalorder %s1546_s13, %s1542_s12 }
   0x8   : > { %s1884_s20 = smov (%p37_p0, %s35_s20), 0  ;;  %p143_p5 = scmp.eq.s32.totalorder %s1153_s19, 1 }
   0x9   : > { %p1626_p4 = por %p137_p2, %p136_p1  ;;  %s121_s23 = ssub.s32 %s1558_s16, %s1884_s20 }
   0xa   : > { %p1158_p6 = scmp.ge.s32.totalorder %s1562_s17, 1  ;;  %p124_p7 = scmp.eq.s32.totalorder %s121_s23, 0 }
   0xb   : > { %p1633_p8 = por %p143_p5, %p142_p3  ;;  %p194_p9 = scmp.lt.s32.totalorder %s1562_s17, 3 }
   0xc   : > { %s1639_s25 = scalar_select %p124_p7, %s1550_s14, %s126_s21  }
   0xd   : > { %p195_p10 = pnand %p1158_p6, %p194_p9 }
   0xe   : > { %s1160_s11 = sshll.u32 (!%p195_p10), %s1554_s15, 5  ;;  %s231_s29 = sand.u32 (!%p195_p10), 1, %s1546_s13  }
   0xf   : > { %198 = sbr.rel (%p195_p10) target bundleno = 315 (0x13b), region = 32  ;;  %p236_p11 = scmp.lt.s32.totalorder (!%p195_p10), %s1160_s11, 63 }
  0x10   : > { %s1159_s5 = sshll.u32 (!%p195_p10), %s231_s29, 8  ;;  %s1504_s27 = scalar_lea.hbm (!%p195_p10), %s1875_s3, 512 }
  0x11   : > { %s1768_s6 = scalar_lea.vmem (!%p195_p10), [#allocation3], %s1159_s5 }
  0x12   : > { %s1038_s18 = sshll.u32 (!%p195_p10), %s1768_s6, 4  ;;  %s1039_s18 = int_to_ptr.vmem [resolvable:$true] %s1038_s18 }
  0x14   : > { %v1400_v0 = vld [vmem:[%s1873_s1 + $0x38] sm:$0xff]  ;;  %v1399_v2 = vld [vmem:[%s1873_s1 + $0x30] sm:$0xff]  ;;  %v1398_v4 = vld [vmem:[%s1873_s1 + $0x28] sm:$0xff]  ;;  %s1886_s11 = smov (!%p236_p11, %s1160_s11), 63 }
  0x15   : > { %v1408_v1 = vld [vmem:[%s1873_s1 + $0x78] sm:$0xff]  ;;  %647 = vmatpush.bf16.msra.mxu0 %v1400_v0  ;;  %1410 = vmatpush.bf16.msra.mxu2 %v1400_v0  ;;  %v1407_v3 = vld [vmem:[%s1873_s1 + $0x70] sm:$0xff]  ;;  %v1406_v5 = vld [vmem:[%s1873_s1 + $0x68] sm:$0xff]  ;;  %s1360_s7 = sshll.u32 %s1886_s11, 3 }
  0x16   : > { %736 = vmatpush.bf16.msra.mxu1 %v1408_v1  ;;  %1418 = vmatpush.bf16.msra.mxu3 %v1408_v1  ;;  %v1397_v6 = vld [vmem:[%s1873_s1 + $0x20] sm:$0xff]  ;;  %v1396_v8 = vld [vmem:[%s1873_s1 + $0x18] sm:$0xff]  ;;  %v1395_v10 = vld [vmem:[%s1873_s1 + $0x10] sm:$0xff]  ;;  %s1684_s19 = scalar_lea.vmem %s1872_s0, %s1360_s7  ;;  %s1409_s7 = sshll.u32 %s1554_s15, 8 }
  0x17   : > { %v1405_v7 = vld [vmem:[%s1873_s1 + $0x60] sm:$0xff]  ;;  %v1404_v9 = vld [vmem:[%s1873_s1 + $0x58] sm:$0xff]  ;;  %v1403_v11 = vld [vmem:[%s1873_s1 + $0x50] sm:$0xff]  ;;  %s1037_s10 = scalar_lea.hbm %s1875_s3, %s1409_s7  ;;  %s1025_s15 = scalar_lea.sflag [#allocation4], %s231_s29 }
  0x18   : > { %v1394_v12 = vld [vmem:[%s1873_s1 + $0x8] sm:$0xff]  ;;  %v1393_v14 = vld [vmem:[%s1873_s1] sm:$0xff]  ;;  %v1173_v28 = vld [vmem:[%s1684_s19 + $0x10] sm:$0xf] }
  0x19   : > { %648 = vmatpush.bf16.msra.mxu0 %v1399_v2  ;;  %1411 = vmatpush.bf16.msra.mxu2 %v1399_v2  ;;  %v1402_v13 = vld [vmem:[%s1873_s1 + $0x48] sm:$0xff]  ;;  %v1401_v15 = vld [vmem:[%s1873_s1 + $0x40] sm:$0xff]  ;;  %v1364_v29 = vld [vmem:[%s1684_s19 + $0x14] sm:$0xf0] }
  0x1a   : > { %737 = vmatpush.bf16.msra.mxu1 %v1407_v3  ;;  %1419 = vmatpush.bf16.msra.mxu3 %v1407_v3  ;;  %v1165_v16 = vld [vmem:[%s1684_s19] sm:$0xf]  ;;  %v1362_v17 = vld [vmem:[%s1684_s19 + $0x4] sm:$0xf0]  ;;  %v1361_v20 = vld [vmem:[%s1684_s19 + $0x4] sm:$0xf]  ;;  %v1174_v36 = vor.u32 %v1364_v29, %v1173_v28 }
  0x1b   : > { %v1229_v18 = vld [vmem:[%s1684_s19 + $0x80] sm:$0xf]  ;;  %v1378_v19 = vld [vmem:[%s1684_s19 + $0x84] sm:$0xf0]  ;;  %v1167_v21 = vld [vmem:[%s1684_s19 + $0x8] sm:$0xf0]  ;;  %v1166_v24 = vor.u32 %v1362_v17, %v1165_v16 }
  0x1c   : > { %v1377_v22 = vld [vmem:[%s1684_s19 + $0x84] sm:$0xf]  ;;  %v1231_v23 = vld [vmem:[%s1684_s19 + $0x88] sm:$0xf0]  ;;  %v1230_v25 = vor.u32 %v1378_v19, %v1229_v18  ;;  %v1170_v26 = vor.u32 %v1361_v20, %v1167_v21  ;;  %v1237_v30 = vld [vmem:[%s1684_s19 + $0x90] sm:$0xf] }
  0x1d   : > { %649 = vmatpush.bf16.msra.mxu0 %v1398_v4  ;;  %1412 = vmatpush.bf16.msra.mxu2 %v1398_v4  ;;  %v1234_v27 = vor.u32 %v1377_v22, %v1231_v23  ;;  %v1380_v31 = vld [vmem:[%s1684_s19 + $0x94] sm:$0xf0]  ;;  %v1363_v32 = vld [vmem:[%s1684_s19 + $0x14] sm:$0xf]  ;;  %v1175_v33 = vld [vmem:[%s1684_s19 + $0x18] sm:$0xf0] }
  0x1e   : > { %738 = vmatpush.bf16.msra.mxu1 %v1406_v5  ;;  %1420 = vmatpush.bf16.msra.mxu3 %v1406_v5  ;;  %v1379_v34 = vld [vmem:[%s1684_s19 + $0x94] sm:$0xf]  ;;  %v1239_v35 = vld [vmem:[%s1684_s19 + $0x98] sm:$0xf0]  ;;  %v1238_v37 = vor.u32 %v1380_v31, %v1237_v30  ;;  %v1178_v38 = vor.u32 %v1363_v32, %v1175_v33  ;;  %v1181_v40 = vld [vmem:[%s1684_s19 + $0x20] sm:$0xf] }
  0x1f   : > { %v1242_v39 = vor.u32 %v1379_v34, %v1239_v35  ;;  %v1366_v41 = vld [vmem:[%s1684_s19 + $0x24] sm:$0xf0]  ;;  %v1245_v42 = vld [vmem:[%s1684_s19 + $0xa0] sm:$0xf]  ;;  %v1365_v44 = vld [vmem:[%s1684_s19 + $0x24] sm:$0xf] }
  0x20   : > { %v1382_v43 = vld [vmem:[%s1684_s19 + $0xa4] sm:$0xf0]  ;;  %v1183_v45 = vld [vmem:[%s1684_s19 + $0x28] sm:$0xf0]  ;;  %v1381_v46 = vld [vmem:[%s1684_s19 + $0xa4] sm:$0xf]  ;;  %v1182_v48 = vor.u32 %v1366_v41, %v1181_v40 }
  0x21   : > { %650 = vmatpush.bf16.msra.mxu0 %v1397_v6  ;;  %1413 = vmatpush.bf16.msra.mxu2 %v1397_v6  ;;  %v1247_v47 = vld [vmem:[%s1684_s19 + $0xa8] sm:$0xf0]  ;;  %v1246_v49 = vor.u32 %v1382_v43, %v1245_v42  ;;  %v1186_v50 = vor.u32 %v1365_v44, %v1183_v45  ;;  %v1189_v52 = vld [vmem:[%s1684_s19 + $0x30] sm:$0xf]  ;;  %v1368_v53 = vld [vmem:[%s1684_s19 + $0x34] sm:$0xf0] }
  0x22   : > { %739 = vmatpush.bf16.msra.mxu1 %v1405_v7  ;;  %1421 = vmatpush.bf16.msra.mxu3 %v1405_v7  ;;  %v1250_v51 = vor.u32 %v1381_v46, %v1247_v47  ;;  %v1253_v54 = vld [vmem:[%s1684_s19 + $0xb0] sm:$0xf]  ;;  %v1384_v55 = vld [vmem:[%s1684_s19 + $0xb4] sm:$0xf0]  ;;  %v1367_v56 = vld [vmem:[%s1684_s19 + $0x34] sm:$0xf]  ;;  %v1190_v60 = vor.u32 %v1368_v53, %v1189_v52 }
  0x23   : > { %v1191_v57 = vld [vmem:[%s1684_s19 + $0x38] sm:$0xf0]  ;;  %v1383_v58 = vld [vmem:[%s1684_s19 + $0xb4] sm:$0xf]  ;;  %v1254_v61 = vor.u32 %v1384_v55, %v1253_v54  ;;  %v1197_v0 = vld [vmem:[%s1684_s19 + $0x40] sm:$0xf] }
  0x24   : > { %v1255_v59 = vld [vmem:[%s1684_s19 + $0xb8] sm:$0xf0]  ;;  %v1194_v62 = vor.u32 %v1367_v56, %v1191_v57  ;;  %v1370_v1 = vld [vmem:[%s1684_s19 + $0x44] sm:$0xf0]  ;;  %v1261_v2 = vld [vmem:[%s1684_s19 + $0xc0] sm:$0xf] }
  0x25   : > { %651 = vmatpush.bf16.msra.mxu0 %v1396_v8  ;;  %1414 = vmatpush.bf16.msra.mxu2 %v1396_v8  ;;  %v1258_v63 = vor.u32 %v1383_v58, %v1255_v59  ;;  %v1386_v3 = vld [vmem:[%s1684_s19 + $0xc4] sm:$0xf0]  ;;  %v1369_v4 = vld [vmem:[%s1684_s19 + $0x44] sm:$0xf]  ;;  %v1199_v5 = vld [vmem:[%s1684_s19 + $0x48] sm:$0xf0]  ;;  %v1198_v8 = vor.u32 %v1370_v1, %v1197_v0 }
  0x26   : > { %740 = vmatpush.bf16.msra.mxu1 %v1404_v9  ;;  %1422 = vmatpush.bf16.msra.mxu3 %v1404_v9  ;;  %v1385_v6 = vld [vmem:[%s1684_s19 + $0xc4] sm:$0xf]  ;;  %v1263_v7 = vld [vmem:[%s1684_s19 + $0xc8] sm:$0xf0]  ;;  %v1262_v9 = vor.u32 %v1386_v3, %v1261_v2  ;;  %v1371_v16 = vld [vmem:[%s1684_s19 + $0x54] sm:$0xf] }
  0x27   : > { %v1207_v17 = vld [vmem:[%s1684_s19 + $0x58] sm:$0xf0]  ;;  %v1387_v18 = vld [vmem:[%s1684_s19 + $0xd4] sm:$0xf]  ;;  %v1373_v28 = vld [vmem:[%s1684_s19 + $0x64] sm:$0xf] }
  0x28   : > { %v1271_v19 = vld [vmem:[%s1684_s19 + $0xd8] sm:$0xf0]  ;;  %v1210_v22 = vor.u32 %v1371_v16, %v1207_v17  ;;  %v1215_v29 = vld [vmem:[%s1684_s19 + $0x68] sm:$0xf0]  ;;  %v1389_v30 = vld [vmem:[%s1684_s19 + $0xe4] sm:$0xf] }
  0x29   : > { %652 = vmatpush.bf16.msra.mxu0 %v1395_v10  ;;  %1415 = vmatpush.bf16.msra.mxu2 %v1395_v10  ;;  %v1202_v10 = vor.u32 %v1369_v4, %v1199_v5  ;;  %v1274_v23 = vor.u32 %v1387_v18, %v1271_v19  ;;  %v1279_v31 = vld [vmem:[%s1684_s19 + $0xe8] sm:$0xf0]  ;;  %v1218_v34 = vor.u32 %v1373_v28, %v1215_v29  ;;  %v1375_v40 = vld [vmem:[%s1684_s19 + $0x74] sm:$0xf]  ;;  %v1223_v41 = vld [vmem:[%s1684_s19 + $0x78] sm:$0xf0] }
  0x2a   : > { %741 = vmatpush.bf16.msra.mxu1 %v1403_v11  ;;  %1423 = vmatpush.bf16.msra.mxu3 %v1403_v11  ;;  %v1266_v11 = vor.u32 %v1385_v6, %v1263_v7  ;;  %v1282_v35 = vor.u32 %v1389_v30, %v1279_v31  ;;  %v1391_v42 = vld [vmem:[%s1684_s19 + $0xf4] sm:$0xf]  ;;  %v1287_v43 = vld [vmem:[%s1684_s19 + $0xf8] sm:$0xf0]  ;;  %v1226_v46 = vor.u32 %v1375_v40, %v1223_v41 }
  0x2b   : > { %v1290_v47 = vor.u32 %v1391_v42, %v1287_v43 }
  0x2d   : > { %653 = vmatpush.bf16.msra.mxu0 %v1394_v12  ;;  %1416 = vmatpush.bf16.msra.mxu2 %v1394_v12  ;;  %v1205_v12 = vld [vmem:[%s1684_s19 + $0x50] sm:$0xf] }
  0x2e   : > { %742 = vmatpush.bf16.msra.mxu1 %v1402_v13  ;;  %1424 = vmatpush.bf16.msra.mxu3 %v1402_v13  ;;  %v1372_v13 = vld [vmem:[%s1684_s19 + $0x54] sm:$0xf0] }
  0x2f   : > { %v1206_v20 = vor.u32 %v1372_v13, %v1205_v12 }
  0x31   : > { %654 = vmatpush.bf16.msra.mxu0 %v1393_v14  ;;  %1417 = vmatpush.bf16.msra.mxu2 %v1393_v14  ;;  %v1269_v14 = vld [vmem:[%s1684_s19 + $0xd0] sm:$0xf] }
  0x32   : > { %743 = vmatpush.bf16.msra.mxu1 %v1401_v15  ;;  %1425 = vmatpush.bf16.msra.mxu3 %v1401_v15  ;;  %v1388_v15 = vld [vmem:[%s1684_s19 + $0xd4] sm:$0xf0] }
  0x33   : > { %v1270_v21 = vor.u32 %v1388_v15, %v1269_v14 }
  0x34   : > { %655 = vmatmul.bf16.vlgmr.msra.gmra.mxu0 %v1166_v24  ;;  %695 = vmatmul.bf16.vlgmr.msra.gmra.mxu2 %v1230_v25  ;;  %v1213_v24 = vld [vmem:[%s1684_s19 + $0x60] sm:$0xf]  ;;  %v1374_v25 = vld [vmem:[%s1684_s19 + $0x64] sm:$0xf0] }
  0x35   : > { %744 = vmatmul.bf16.vlgmr.msra.gmra.mxu1 %v1170_v26  ;;  %784 = vmatmul.bf16.vlgmr.msra.gmra.mxu3 %v1234_v27  ;;  %v1277_v26 = vld [vmem:[%s1684_s19 + $0xe0] sm:$0xf]  ;;  %v1390_v27 = vld [vmem:[%s1684_s19 + $0xe4] sm:$0xf0]  ;;  %v1214_v32 = vor.u32 %v1374_v25, %v1213_v24 }
  0x36   : > { %v1278_v33 = vor.u32 %v1390_v27, %v1277_v26 }
  0x44   : > { %660 = vmatmul.bf16.gmra.mxu0 %v1174_v36  ;;  %700 = vmatmul.bf16.gmra.mxu2 %v1238_v37  ;;  %v1221_v36 = vld [vmem:[%s1684_s19 + $0x70] sm:$0xf]  ;;  %v1376_v37 = vld [vmem:[%s1684_s19 + $0x74] sm:$0xf0] }
  0x45   : > { %749 = vmatmul.bf16.gmra.mxu1 %v1178_v38  ;;  %789 = vmatmul.bf16.gmra.mxu3 %v1242_v39  ;;  %v1285_v38 = vld [vmem:[%s1684_s19 + $0xf0] sm:$0xf]  ;;  %v1392_v39 = vld [vmem:[%s1684_s19 + $0xf4] sm:$0xf0]  ;;  %v1222_v44 = vor.u32 %v1376_v37, %v1221_v36  ;;  %s1040_s19 = sshll.u32 %s1037_s10, 4  ;;  %s1041_s19 = int_to_ptr.hbm [resolvable:$true] %s1040_s19 }
  0x46   : > { %v1286_v45 = vor.u32 %v1392_v39, %v1285_v38  ;;  %s1498_s11 = sshra.s32 %s1041_s19, 4  ;;  %s1499_s11 = int_to_ptr.hbm [resolvable:$true] %s1498_s11 }
  0x47   : > { %s1500_s21 = scalar_lea.hbm %s1499_s11, 256  ;;  %p1505_p1 = scmp.lt.s32.totalorder %s1499_s11, %s1875_s3 }
  0x48   : > { %p1501_p12 = scmp.ne.s32.totalorder %s1499_s11, %s1500_s21  ;;  %p1506_p2 = scmp.lt.s32.totalorder %s1504_s27, %s1500_s21 }
  0x4a   : > { %p1502_p13 = pnand %p1501_p12, %p1626_p4  ;;  %p1507_p3 = por %p1506_p2, %p1505_p1 }
  0x4c   : > { %p1503_p0 = pneg %p1502_p13 }
  0x4e   : > { %p1508_p5 = pnand %p1507_p3, %p1503_p0 }
  0x54   : > { %665 = vmatmul.bf16.gmra.mxu0 %v1182_v48  ;;  %705 = vmatmul.bf16.gmra.mxu2 %v1246_v49  ;;  %v1763_v49 = vld [vmem:[%s1874_s2] ss:$0 sm:$0xff] }
  0x55   : > { %754 = vmatmul.bf16.gmra.mxu1 %v1186_v50  ;;  %794 = vmatmul.bf16.gmra.mxu3 %v1250_v51 }
  0x64   : > { %670 = vmatmul.bf16.gmra.mxu0 %v1190_v60  ;;  %710 = vmatmul.bf16.gmra.mxu2 %v1254_v61 }
  0x65   : > { %759 = vmatmul.bf16.gmra.mxu1 %v1194_v62  ;;  %799 = vmatmul.bf16.gmra.mxu3 %v1258_v63 }
  0x74   : > { %675 = vmatmul.bf16.gmra.mxu0 %v1198_v8  ;;  %715 = vmatmul.bf16.gmra.mxu2 %v1262_v9 }
  0x75   : > { %764 = vmatmul.bf16.gmra.mxu1 %v1202_v10  ;;  %804 = vmatmul.bf16.gmra.mxu3 %v1266_v11 }
  0x84   : > { %680 = vmatmul.bf16.gmra.mxu0 %v1206_v20  ;;  %720 = vmatmul.bf16.gmra.mxu2 %v1270_v21 }
  0x85   : > { %769 = vmatmul.bf16.gmra.mxu1 %v1210_v22  ;;  %809 = vmatmul.bf16.gmra.mxu3 %v1274_v23 }
  0x94   : > { %685 = vmatmul.bf16.gmra.mxu0 %v1214_v32  ;;  %725 = vmatmul.bf16.gmra.mxu2 %v1278_v33 }
  0x95   : > { %774 = vmatmul.bf16.gmra.mxu1 %v1218_v34  ;;  %814 = vmatmul.bf16.gmra.mxu3 %v1282_v35 }
  0xa4   : > { %690 = vmatmul.bf16.gmra.mxu0 %v1222_v44  ;;  %730 = vmatmul.bf16.gmra.mxu2 %v1286_v45 }
  0xa5   : > { %779 = vmatmul.bf16.gmra.mxu1 %v1226_v46  ;;  %819 = vmatmul.bf16.gmra.mxu3 %v1290_v47 }
  0xb1   : > { %v656_v48 = vpop.f32.mrf.mxu0 }
  0xb2   : > { %v745_v50 = vpop.f32.mrf.mxu1 }
  0xb3   : > { %v746_v51 = vadd.f32 %v745_v50, %v656_v48 }
  0xb5   : > { %v928_v52 = vadd.f32 %v1763_v49, %v746_v51 }
  0xb7   : > { %v960_v53 = vmax.f32 %v928_v52, 0.0  ;;  %v696_v54 = vpop.f32.mrf.mxu2 }
  0xb8   : > { %v785_v55 = vpop.f32.mrf.mxu3 }
  0xb9   : > { %992 = vst [vmem:[%s1768_s6] sm:$0xff] %v960_v53  ;;  %v786_v56 = vadd.f32 %v785_v55, %v696_v54  ;;  %v658_v57 = vpop.f32.mrf.mxu0 }
  0xba   : > { %v747_v58 = vpop.f32.mrf.mxu1 }
  0xbb   : > { %v944_v59 = vadd.f32 %v1763_v49, %v786_v56  ;;  %v748_v60 = vadd.f32 %v747_v58, %v658_v57 }
  0xbd   : > { %v976_v61 = vmax.f32 %v944_v59, 0.0  ;;  %v929_v62 = vadd.f32 %v1763_v49, %v748_v60 }
  0xbf   : > { %1008 = vst [vmem:[%s1768_s6 + $0x80] sm:$0xff] %v976_v61  ;;  %v961_v63 = vmax.f32 %v929_v62, 0.0  ;;  %v698_v0 = vpop.f32.mrf.mxu2 }
  0xc0   : > { %v787_v1 = vpop.f32.mrf.mxu3 }
  0xc1   : > { %993 = vst [vmem:[%s1768_s6 + $0x8] sm:$0xff] %v961_v63  ;;  %v788_v2 = vadd.f32 %v787_v1, %v698_v0  ;;  %v661_v3 = vpop.f32.mrf.mxu0 }
  0xc2   : > { %v750_v4 = vpop.f32.mrf.mxu1 }
  0xc3   : > { %v945_v5 = vadd.f32 %v1763_v49, %v788_v2  ;;  %v751_v6 = vadd.f32 %v750_v4, %v661_v3 }
  0xc5   : > { %v977_v7 = vmax.f32 %v945_v5, 0.0  ;;  %v930_v8 = vadd.f32 %v1763_v49, %v751_v6 }
  0xc7   : > { %1009 = vst [vmem:[%s1768_s6 + $0x88] sm:$0xff] %v977_v7  ;;  %v962_v9 = vmax.f32 %v930_v8, 0.0  ;;  %v701_v10 = vpop.f32.mrf.mxu2 }
  0xc8   : > { %v790_v11 = vpop.f32.mrf.mxu3 }
  0xc9   : > { %994 = vst [vmem:[%s1768_s6 + $0x10] sm:$0xff] %v962_v9  ;;  %v791_v12 = vadd.f32 %v790_v11, %v701_v10  ;;  %v663_v13 = vpop.f32.mrf.mxu0 }
  0xca   : > { %v752_v14 = vpop.f32.mrf.mxu1 }
  0xcb   : > { %v946_v15 = vadd.f32 %v1763_v49, %v791_v12  ;;  %v753_v16 = vadd.f32 %v752_v14, %v663_v13 }
  0xcd   : > { %v978_v17 = vmax.f32 %v946_v15, 0.0  ;;  %v931_v18 = vadd.f32 %v1763_v49, %v753_v16 }
  0xcf   : > { %1010 = vst [vmem:[%s1768_s6 + $0x90] sm:$0xff] %v978_v17  ;;  %v963_v19 = vmax.f32 %v931_v18, 0.0  ;;  %v703_v20 = vpop.f32.mrf.mxu2 }
  0xd0   : > { %v792_v21 = vpop.f32.mrf.mxu3 }
  0xd1   : > { %995 = vst [vmem:[%s1768_s6 + $0x18] sm:$0xff] %v963_v19  ;;  %v793_v22 = vadd.f32 %v792_v21, %v703_v20  ;;  %v666_v23 = vpop.f32.mrf.mxu0 }
  0xd2   : > { %v755_v24 = vpop.f32.mrf.mxu1 }
  0xd3   : > { %v947_v25 = vadd.f32 %v1763_v49, %v793_v22  ;;  %v756_v26 = vadd.f32 %v755_v24, %v666_v23 }
  0xd5   : > { %v979_v27 = vmax.f32 %v947_v25, 0.0  ;;  %v932_v28 = vadd.f32 %v1763_v49, %v756_v26 }
  0xd7   : > { %1011 = vst [vmem:[%s1768_s6 + $0x98] sm:$0xff] %v979_v27  ;;  %v964_v29 = vmax.f32 %v932_v28, 0.0  ;;  %v706_v30 = vpop.f32.mrf.mxu2 }
  0xd8   : > { %v795_v31 = vpop.f32.mrf.mxu3 }
  0xd9   : > { %996 = vst [vmem:[%s1768_s6 + $0x20] sm:$0xff] %v964_v29  ;;  %v796_v32 = vadd.f32 %v795_v31, %v706_v30  ;;  %v668_v33 = vpop.f32.mrf.mxu0 }
  0xda   : > { %v757_v34 = vpop.f32.mrf.mxu1 }
  0xdb   : > { %v948_v35 = vadd.f32 %v1763_v49, %v796_v32  ;;  %v758_v36 = vadd.f32 %v757_v34, %v668_v33 }
  0xdd   : > { %v980_v37 = vmax.f32 %v948_v35, 0.0  ;;  %v933_v38 = vadd.f32 %v1763_v49, %v758_v36 }
  0xdf   : > { %1012 = vst [vmem:[%s1768_s6 + $0xa0] sm:$0xff] %v980_v37  ;;  %v965_v39 = vmax.f32 %v933_v38, 0.0  ;;  %v708_v40 = vpop.f32.mrf.mxu2 }
  0xe0   : > { %v797_v41 = vpop.f32.mrf.mxu3 }
  0xe1   : > { %997 = vst [vmem:[%s1768_s6 + $0x28] sm:$0xff] %v965_v39  ;;  %v798_v42 = vadd.f32 %v797_v41, %v708_v40  ;;  %v671_v43 = vpop.f32.mrf.mxu0 }
  0xe2   : > { %v760_v44 = vpop.f32.mrf.mxu1 }
  0xe3   : > { %v949_v45 = vadd.f32 %v1763_v49, %v798_v42  ;;  %v761_v46 = vadd.f32 %v760_v44, %v671_v43 }
  0xe5   : > { %v981_v47 = vmax.f32 %v949_v45, 0.0  ;;  %v934_v48 = vadd.f32 %v1763_v49, %v761_v46 }
  0xe7   : > { %1013 = vst [vmem:[%s1768_s6 + $0xa8] sm:$0xff] %v981_v47  ;;  %v966_v50 = vmax.f32 %v934_v48, 0.0  ;;  %v711_v51 = vpop.f32.mrf.mxu2 }
  0xe8   : > { %v800_v52 = vpop.f32.mrf.mxu3 }
  0xe9   : > { %998 = vst [vmem:[%s1768_s6 + $0x30] sm:$0xff] %v966_v50  ;;  %v801_v53 = vadd.f32 %v800_v52, %v711_v51  ;;  %v673_v54 = vpop.f32.mrf.mxu0 }
  0xea   : > { %v762_v55 = vpop.f32.mrf.mxu1 }
  0xeb   : > { %v950_v56 = vadd.f32 %v1763_v49, %v801_v53  ;;  %v763_v57 = vadd.f32 %v762_v55, %v673_v54 }
  0xed   : > { %v982_v58 = vmax.f32 %v950_v56, 0.0  ;;  %v935_v59 = vadd.f32 %v1763_v49, %v763_v57 }
  0xef   : > { %1014 = vst [vmem:[%s1768_s6 + $0xb0] sm:$0xff] %v982_v58  ;;  %v967_v60 = vmax.f32 %v935_v59, 0.0  ;;  %v713_v61 = vpop.f32.mrf.mxu2 }
  0xf0   : > { %v802_v62 = vpop.f32.mrf.mxu3 }
  0xf1   : > { %999 = vst [vmem:[%s1768_s6 + $0x38] sm:$0xff] %v967_v60  ;;  %v803_v63 = vadd.f32 %v802_v62, %v713_v61  ;;  %v676_v0 = vpop.f32.mrf.mxu0 }
  0xf2   : > { %v765_v1 = vpop.f32.mrf.mxu1 }
  0xf3   : > { %v951_v2 = vadd.f32 %v1763_v49, %v803_v63  ;;  %v766_v3 = vadd.f32 %v765_v1, %v676_v0 }
  0xf5   : > { %v983_v4 = vmax.f32 %v951_v2, 0.0  ;;  %v936_v5 = vadd.f32 %v1763_v49, %v766_v3 }
  0xf7   : > { %1015 = vst [vmem:[%s1768_s6 + $0xb8] sm:$0xff] %v983_v4  ;;  %v968_v6 = vmax.f32 %v936_v5, 0.0  ;;  %v716_v7 = vpop.f32.mrf.mxu2 }
  0xf8   : > { %v805_v8 = vpop.f32.mrf.mxu3 }
  0xf9   : > { %1000 = vst [vmem:[%s1768_s6 + $0x40] sm:$0xff] %v968_v6  ;;  %v806_v9 = vadd.f32 %v805_v8, %v716_v7  ;;  %v678_v10 = vpop.f32.mrf.mxu0 }
  0xfa   : > { %v767_v11 = vpop.f32.mrf.mxu1 }
  0xfb   : > { %v952_v12 = vadd.f32 %v1763_v49, %v806_v9  ;;  %v768_v13 = vadd.f32 %v767_v11, %v678_v10 }
  0xfd   : > { %v984_v14 = vmax.f32 %v952_v12, 0.0  ;;  %v937_v15 = vadd.f32 %v1763_v49, %v768_v13 }
  0xff   : > { %1016 = vst [vmem:[%s1768_s6 + $0xc0] sm:$0xff] %v984_v14  ;;  %v969_v16 = vmax.f32 %v937_v15, 0.0  ;;  %v718_v17 = vpop.f32.mrf.mxu2 }
 0x100   : > { %v807_v18 = vpop.f32.mrf.mxu3 }
 0x101   : > { %1001 = vst [vmem:[%s1768_s6 + $0x48] sm:$0xff] %v969_v16  ;;  %v808_v19 = vadd.f32 %v807_v18, %v718_v17  ;;  %v681_v20 = vpop.f32.mrf.mxu0 }
 0x102   : > { %v770_v21 = vpop.f32.mrf.mxu1 }
 0x103   : > { %v953_v22 = vadd.f32 %v1763_v49, %v808_v19  ;;  %v771_v23 = vadd.f32 %v770_v21, %v681_v20 }
 0x105   : > { %v985_v24 = vmax.f32 %v953_v22, 0.0  ;;  %v938_v25 = vadd.f32 %v1763_v49, %v771_v23 }
 0x107   : > { %1017 = vst [vmem:[%s1768_s6 + $0xc8] sm:$0xff] %v985_v24  ;;  %v970_v26 = vmax.f32 %v938_v25, 0.0  ;;  %v721_v27 = vpop.f32.mrf.mxu2 }
 0x108   : > { %v810_v28 = vpop.f32.mrf.mxu3 }
 0x109   : > { %1002 = vst [vmem:[%s1768_s6 + $0x50] sm:$0xff] %v970_v26  ;;  %v811_v29 = vadd.f32 %v810_v28, %v721_v27  ;;  %v683_v30 = vpop.f32.mrf.mxu0 }
 0x10a   : > { %v772_v31 = vpop.f32.mrf.mxu1 }
 0x10b   : > { %v954_v32 = vadd.f32 %v1763_v49, %v811_v29  ;;  %v773_v33 = vadd.f32 %v772_v31, %v683_v30 }
 0x10d   : > { %v986_v34 = vmax.f32 %v954_v32, 0.0  ;;  %v939_v35 = vadd.f32 %v1763_v49, %v773_v33 }
 0x10f   : > { %1018 = vst [vmem:[%s1768_s6 + $0xd0] sm:$0xff] %v986_v34  ;;  %v971_v36 = vmax.f32 %v939_v35, 0.0  ;;  %v723_v37 = vpop.f32.mrf.mxu2 }
 0x110   : > { %v812_v38 = vpop.f32.mrf.mxu3 }
 0x111   : > { %1003 = vst [vmem:[%s1768_s6 + $0x58] sm:$0xff] %v971_v36  ;;  %v813_v39 = vadd.f32 %v812_v38, %v723_v37  ;;  %v686_v40 = vpop.f32.mrf.mxu0 }
 0x112   : > { %v775_v41 = vpop.f32.mrf.mxu1 }
 0x113   : > { %v955_v42 = vadd.f32 %v1763_v49, %v813_v39  ;;  %v776_v43 = vadd.f32 %v775_v41, %v686_v40 }
 0x115   : > { %v987_v44 = vmax.f32 %v955_v42, 0.0  ;;  %v940_v45 = vadd.f32 %v1763_v49, %v776_v43 }
 0x117   : > { %1019 = vst [vmem:[%s1768_s6 + $0xd8] sm:$0xff] %v987_v44  ;;  %v972_v46 = vmax.f32 %v940_v45, 0.0  ;;  %v726_v47 = vpop.f32.mrf.mxu2 }
 0x118   : > { %v815_v48 = vpop.f32.mrf.mxu3 }
 0x119   : > { %1004 = vst [vmem:[%s1768_s6 + $0x60] sm:$0xff] %v972_v46  ;;  %v816_v50 = vadd.f32 %v815_v48, %v726_v47  ;;  %v688_v51 = vpop.f32.mrf.mxu0 }
 0x11a   : > { %v777_v52 = vpop.f32.mrf.mxu1 }
 0x11b   : > { %v956_v53 = vadd.f32 %v1763_v49, %v816_v50  ;;  %v778_v54 = vadd.f32 %v777_v52, %v688_v51 }
 0x11d   : > { %v988_v55 = vmax.f32 %v956_v53, 0.0  ;;  %v941_v56 = vadd.f32 %v1763_v49, %v778_v54 }
 0x11f   : > { %1020 = vst [vmem:[%s1768_s6 + $0xe0] sm:$0xff] %v988_v55  ;;  %v973_v57 = vmax.f32 %v941_v56, 0.0  ;;  %v728_v58 = vpop.f32.mrf.mxu2 }
 0x120   : > { %v817_v59 = vpop.f32.mrf.mxu3 }
 0x121   : > { %1005 = vst [vmem:[%s1768_s6 + $0x68] sm:$0xff] %v973_v57  ;;  %v818_v60 = vadd.f32 %v817_v59, %v728_v58  ;;  %v691_v61 = vpop.f32.mrf.mxu0 }
 0x122   : > { %v780_v62 = vpop.f32.mrf.mxu1 }
 0x123   : > { %v957_v63 = vadd.f32 %v1763_v49, %v818_v60  ;;  %v781_v0 = vadd.f32 %v780_v62, %v691_v61 }
 0x125   : > { %v989_v1 = vmax.f32 %v957_v63, 0.0  ;;  %v942_v2 = vadd.f32 %v1763_v49, %v781_v0 }
 0x127   : > { %1021 = vst [vmem:[%s1768_s6 + $0xe8] sm:$0xff] %v989_v1  ;;  %v974_v3 = vmax.f32 %v942_v2, 0.0  ;;  %v731_v4 = vpop.f32.mrf.mxu2 }
 0x128   : > { %v820_v5 = vpop.f32.mrf.mxu3 }
 0x129   : > { %1006 = vst [vmem:[%s1768_s6 + $0x70] sm:$0xff] %v974_v3  ;;  %v821_v6 = vadd.f32 %v820_v5, %v731_v4  ;;  %v693_v7 = vpop.f32.mrf.mxu0 }
 0x12a   : > { %v782_v8 = vpop.f32.mrf.mxu1 }
 0x12b   : > { %v958_v9 = vadd.f32 %v1763_v49, %v821_v6  ;;  %v783_v10 = vadd.f32 %v782_v8, %v693_v7 }
 0x12d   : > { %v990_v11 = vmax.f32 %v958_v9, 0.0  ;;  %v943_v12 = vadd.f32 %v1763_v49, %v783_v10 }
 0x12f   : > { %1022 = vst [vmem:[%s1768_s6 + $0xf0] sm:$0xff] %v990_v11  ;;  %v975_v13 = vmax.f32 %v943_v12, 0.0  ;;  %v733_v14 = vpop.f32.mrf.mxu2 }
 0x130   : > { %v822_v15 = vpop.f32.mrf.mxu3 }
 0x131   : > { %1007 = vst [vmem:[%s1768_s6 + $0x78] sm:$0xff] %v975_v13  ;;  %v823_v16 = vadd.f32 %v822_v15, %v733_v14 }
 0x133   : > { %v959_v17 = vadd.f32 %v1763_v49, %v823_v16 }
 0x135   : > { %v991_v18 = vmax.f32 %v959_v17, 0.0 }
 0x137   : > { %1023 = vst [vmem:[%s1768_s6 + $0xf8] sm:$0xff] %v991_v18 }
 0x138   : > { %1511 = shalt.err (!%p1508_p5)
}
 0x139   : > { %s1564_s29 = smov 128   ;;  %s1565_s4 = smov 8  }
 0x13a   : > { %1426 = dma.vmem_to_hbm [thread:$0]  (%p1626_p4), %s1039_s18, 4096, %s1041_s19, %s1025_s15, %s1564_s29, %s1564_s29, %s1565_s4  }
 0x13b PF: > { %p1432_p6 = scmp.ge.s32.totalorder %s1562_s17, 2  ;;  %s1055_s5 = sand.u32 1, %s1542_s12  }
 0x13c   : > { %s1056_s6 = scalar_lea.sflag [#allocation4], %s1055_s5 }
 0x13d   : > { %p1429_p7 = pnand %p1432_p6, %p1633_p8 }
 0x13f   : > { %p1430_p9 = pneg %p1429_p7 }
 0x141   : > { %1537 = dma.done.wait (%p1430_p9), %s1056_s6, 4096  }
 0x142   : > { %1539 = vsyncadd (%p1430_p9), %s1056_s6, 4294963200  ;;  %s16_s17 = sadd.s32 1, %s1562_s17   ;;  %s1878_s12 = smov %s1546_s13 }
 0x143   : > { %p13_p10 = scmp.ge.s32.totalorder %s16_s17, 4   ;;  %s1879_s13 = smov %s1550_s14 }
 0x144   : > { %s1880_s14 = smov %s1639_s25  ;;  %s1881_s15 = smov %s1558_s16 }
 0x145   : > { %s1882_s16 = smov %s1884_s20  ;;  %15 = sbr.rel (!%p13_p10) target bundleno = 4 (0x4), region = 81 }
 0x14a   :  { %1062 = vsyncpa [#allocation4], 1 }
 0x14b   :  { %1064 = vsyncpa [#allocation4 + $0x1], 1 }

</bundles_post_ra>
